<compile_context>
chip_gen: v5e
topology: v5e:2x2
jax: 0.10.0
libtpu: 0.0.40
codegen_flags: <defaults>
</compile_context>

<pallas_src>
import functools

import jax
import jax.numpy as jnp
from jax.experimental import pallas as pl
from jax.experimental.pallas import tpu as pltpu


def _round_up(x: int, m: int) -> int:
    return (x + m - 1) // m * m


def _pick_vmem_limit_bytes():
    """Generation-aware scoped-VMEM limit (~3/4 of physical, capped at 100 MiB)."""
    try:
        cap = int(pltpu.get_tpu_info().vmem_capacity_bytes)
        if cap <= 0:
            return None
        return min((cap * 3) // 4, 100 * 1024 * 1024)
    except Exception:
        return None  # fall back to the compiler default


def _resident_spec(block_shape):
    """BlockSpec for a VMEM-resident operand (constant index map, single buffer)."""
    idx = lambda i: (0, 0)
    if hasattr(pl, "Buffered"):
        try:
            return pl.BlockSpec(block_shape, idx, pipeline_mode=pl.Buffered(1))
        except Exception:
            pass
    return pl.BlockSpec(block_shape, idx)


def _mlp_kernel(x_ref, w1_ref, b1_ref, w2_ref, b2_ref, w3_ref, b3_ref, o_ref):
    # Cast x to bf16 in-kernel (input streamed as f32; no wrapper cast pass).
    x = x_ref[...].astype(jnp.bfloat16)
    # Layer 1: bf16 MXU matmul, f32 accumulate; bias/ReLU in f32.
    h1 = jnp.dot(x, w1_ref[...], preferred_element_type=jnp.float32)
    h1 = jnp.maximum(h1 + b1_ref[...], 0.0)
    # Layer 2.
    h2 = jnp.dot(h1.astype(jnp.bfloat16), w2_ref[...],
                 preferred_element_type=jnp.float32)
    h2 = jnp.maximum(h2 + b2_ref[...], 0.0)
    # Layer 3 (no activation).
    out = jnp.dot(h2.astype(jnp.bfloat16), w3_ref[...],
                  preferred_element_type=jnp.float32)
    o_ref[...] = (out + b3_ref[...]).astype(o_ref.dtype)


@functools.partial(jax.jit, static_argnames=("block_batch",))
def simple_nn_forward(x, params, *, block_batch: int = 512):
    """Fused SimpleNN forward.

    x: (B, input_size) float32
    params: dict with w1 (in,h1), b1 (1,h1), w2 (h1,h2), b2 (1,h2),
            w3 (h2,out), b3 (1,out)   [weights already transposed vs. PyTorch]
    """
    # Weights cast to bf16 once (tiny, one-time); biases stay f32.
    w1 = params["w1"].astype(jnp.bfloat16)
    w2 = params["w2"].astype(jnp.bfloat16)
    w3 = params["w3"].astype(jnp.bfloat16)
    b1 = params["b1"].astype(jnp.float32)
    b2 = params["b2"].astype(jnp.float32)
    b3 = params["b3"].astype(jnp.float32)

    B, in_size = x.shape
    h1_size, h2_size, out_size = w1.shape[1], w2.shape[1], w3.shape[1]

    # Batch tiling: one full-batch block when it fits, else 16-aligned tiles
    # (bf16 packs 2 rows per sublane; also satisfies the (8,128) block rule).
    if B <= block_batch:
        tb, B_pad = B, B
    else:
        tb = max(16, (min(block_batch, B) // 16) * 16)
        B_pad = _round_up(B, tb)
    num_blocks = B_pad // tb

    xp = x if B_pad == B else jnp.pad(x, ((0, B_pad - B), (0, 0)))

    flops = 2 * B_pad * (in_size * h1_size + h1_size * h2_size + h2_size * out_size)
    bytes_accessed = (
        B_pad * in_size * 4                                    # x (f32 in)
        + (w1.size + w2.size + w3.size) * 2                    # bf16 weights
        + (b1.size + b2.size + b3.size) * 4                    # f32 biases
        + B_pad * out_size * 4                                 # f32 output
    )

    out = pl.pallas_call(
        _mlp_kernel,
        out_shape=jax.ShapeDtypeStruct((B_pad, out_size), jnp.float32),
        grid=(num_blocks,),
        in_specs=[
            pl.BlockSpec((tb, in_size), lambda i: (i, 0)),     # x: streams over batch
            _resident_spec((in_size, h1_size)),                # w1 (VMEM resident)
            _resident_spec((1, h1_size)),                      # b1
            _resident_spec((h1_size, h2_size)),                # w2
            _resident_spec((1, h2_size)),                      # b2
            _resident_spec((h2_size, out_size)),               # w3
            _resident_spec((1, out_size)),                     # b3
        ],
        out_specs=pl.BlockSpec((tb, out_size), lambda i: (i, 0)),
        compiler_params=pltpu.CompilerParams(
            dimension_semantics=("parallel",),                 # v7x: shard across 2 TCs
            vmem_limit_bytes=_pick_vmem_limit_bytes(),
        ),
        cost_estimate=pl.CostEstimate(
            flops=flops, transcendentals=0, bytes_accessed=bytes_accessed
        ),
    )(xp, w1, b1, w2, b2, w3, b3)

    # Only slice if batch rows were padded (feature dims were never padded).
    return out if B_pad == B else out[:B]


def init_params(key, input_size, hidden_size, hidden_size2, output_size):
    """Deterministic init matching nn.Linear shapes (weights stored transposed)."""
    ks = jax.random.split(key, 6)

    def linear(kw, kb, fan_in, fan_out):
        bound = 1.0 / jnp.sqrt(jnp.float32(fan_in))
        w = jax.random.uniform(kw, (fan_in, fan_out), jnp.float32, -bound, bound)
        b = jax.random.uniform(kb, (1, fan_out), jnp.float32, -bound, bound)
        return w, b

    w1, b1 = linear(ks[0], ks[1], input_size, hidden_size)
    w2, b2 = linear(ks[2], ks[3], hidden_size, hidden_size2)
    w3, b3 = linear(ks[4], ks[5], hidden_size2, output_size)
    return {"w1": w1, "b1": b1, "w2": w2, "b2": b2, "w3": w3, "b3": b3}


def _reference_forward_bf16(x, p):
    """Pure-JAX reference with the same bf16-operand / f32-accumulate recipe."""
    bf = jnp.bfloat16
    h1 = jnp.dot(x.astype(bf), p["w1"].astype(bf), preferred_element_type=jnp.float32)
    h1 = jnp.maximum(h1 + p["b1"], 0.0)
    h2 = jnp.dot(h1.astype(bf), p["w2"].astype(bf), preferred_element_type=jnp.float32)
    h2 = jnp.maximum(h2 + p["b2"], 0.0)
    return jnp.dot(h2.astype(bf), p["w3"].astype(bf),
                   preferred_element_type=jnp.float32) + p["b3"]


def _reference_forward_f32(x, p):
    h1 = jnp.maximum(x @ p["w1"] + p["b1"], 0.0)
    h2 = jnp.maximum(h1 @ p["w2"] + p["b2"], 0.0)
    return h2 @ p["w3"] + p["b3"]


if __name__ == "__main__":
    key = jax.random.PRNGKey(0)
    k_x, k_p = jax.random.split(key)

    batch = 32
    input_size, hidden_size, hidden_size2, output_size = 32, 64, 48, 16

    x = jax.random.normal(k_x, (batch, input_size), jnp.float32)
    params = init_params(k_p, input_size, hidden_size, hidden_size2, output_size)

    # Multi-step batch grid (2 steps of 16 rows, no padding).
    out = jax.block_until_ready(simple_nn_forward(x, params, block_batch=16))
    assert out.shape == (batch, output_size)

    # Single-block path (default block_batch covers the whole batch).
    out_single = jax.block_until_ready(simple_nn_forward(x, params))
    assert jnp.allclose(out, out_single, atol=1e-4, rtol=1e-4)

    # Ragged-batch path (B not a multiple of the tile -> row pad + slice).
    out_ragged = jax.block_until_ready(simple_nn_forward(x[:24], params, block_batch=16))
    assert out_ragged.shape == (24, output_size)
    assert jnp.allclose(out_ragged, out[:24], atol=1e-4, rtol=1e-4)

    # Tight check against a reference using the same bf16/f32 recipe.
    ref_bf16 = _reference_forward_bf16(x, params)
    assert jnp.allclose(out, ref_bf16, atol=1e-3, rtol=1e-3), \
        "mismatch vs bf16-operand JAX reference"

    # Loose semantic check against the original full-f32 forward.
    # NOTE: bf16 matmul operands intentionally trade ~3 decimal digits for MXU speed.
    ref_f32 = _reference_forward_f32(x, params)
    assert jnp.allclose(out, ref_f32, atol=5e-2, rtol=5e-2), \
        "mismatch vs f32 JAX reference"

    print("KERNEL_OK")
</pallas_src>

<mosaic_0001>
module attributes {stable_mosaic.version = 11 : i64} {
  func.func @_mlp_kernel(%arg0: i32, %arg1: memref<16x32xf32, #tpu.memory_space<vmem>>, %arg2: memref<32x64xbf16, #tpu.memory_space<vmem>>, %arg3: memref<1x64xf32, #tpu.memory_space<vmem>>, %arg4: memref<64x48xbf16, #tpu.memory_space<vmem>>, %arg5: memref<1x48xf32, #tpu.memory_space<vmem>>, %arg6: memref<48x16xbf16, #tpu.memory_space<vmem>>, %arg7: memref<1x16xf32, #tpu.memory_space<vmem>>, %arg8: memref<16x16xf32, #tpu.memory_space<vmem>>) attributes {dimension_semantics = [#tpu.dimension_semantics<parallel>], iteration_bounds = array<i64: 2>, scalar_prefetch = 0 : i64, scratch_operands = 0 : i64, tpu.core_type = #tpu.core_type<tc>, window_params = [{transform_indices = @transform_0, window_bounds = array<i64: 16, 32>}, {pipeline_mode = #tpu.pipeline_mode<synchronous>, transform_indices = @transform_1, window_bounds = array<i64: 32, 64>}, {pipeline_mode = #tpu.pipeline_mode<synchronous>, transform_indices = @transform_2, window_bounds = array<i64: 1, 64>}, {pipeline_mode = #tpu.pipeline_mode<synchronous>, transform_indices = @transform_3, window_bounds = array<i64: 64, 48>}, {pipeline_mode = #tpu.pipeline_mode<synchronous>, transform_indices = @transform_4, window_bounds = array<i64: 1, 48>}, {pipeline_mode = #tpu.pipeline_mode<synchronous>, transform_indices = @transform_5, window_bounds = array<i64: 48, 16>}, {pipeline_mode = #tpu.pipeline_mode<synchronous>, transform_indices = @transform_6, window_bounds = array<i64: 1, 16>}, {transform_indices = @transform_7, window_bounds = array<i64: 16, 16>}]} {
    %c0 = arith.constant 0 : index
    %c0_0 = arith.constant 0 : index
    %0 = vector.load %arg1[%c0, %c0_0] : memref<16x32xf32, #tpu.memory_space<vmem>>, vector<16x32xf32>
    %1 = arith.truncf %0 : vector<16x32xf32> to vector<16x32xbf16>
    %c0_1 = arith.constant 0 : index
    %c0_2 = arith.constant 0 : index
    %2 = vector.load %arg2[%c0_1, %c0_2] : memref<32x64xbf16, #tpu.memory_space<vmem>>, vector<32x64xbf16>
    %cst = arith.constant dense<0.000000e+00> : vector<16x64xf32>
    %3 = tpu.matmul %1, %2, %cst {dimension_numbers = #tpu.dot_dimension_numbers<[1], [0], [0], [1], [0, 0, 1, 1], [], []>} : vector<16x32xbf16>, vector<32x64xbf16>, vector<16x64xf32> -> vector<16x64xf32>
    %c0_3 = arith.constant 0 : index
    %c0_4 = arith.constant 0 : index
    %4 = vector.load %arg3[%c0_3, %c0_4] : memref<1x64xf32, #tpu.memory_space<vmem>>, vector<1x64xf32>
    %5 = vector.broadcast %4 : vector<1x64xf32> to vector<16x64xf32>
    %6 = arith.addf %3, %5 : vector<16x64xf32>
    %cst_5 = arith.constant 0.000000e+00 : f32
    %7 = vector.broadcast %cst_5 : f32 to vector<16x64xf32>
    %8 = arith.maximumf %6, %7 : vector<16x64xf32>
    %9 = arith.truncf %8 : vector<16x64xf32> to vector<16x64xbf16>
    %c0_6 = arith.constant 0 : index
    %c0_7 = arith.constant 0 : index
    %10 = vector.load %arg4[%c0_6, %c0_7] : memref<64x48xbf16, #tpu.memory_space<vmem>>, vector<64x48xbf16>
    %cst_8 = arith.constant dense<0.000000e+00> : vector<16x48xf32>
    %11 = tpu.matmul %9, %10, %cst_8 {dimension_numbers = #tpu.dot_dimension_numbers<[1], [0], [0], [1], [0, 0, 1, 1], [], []>} : vector<16x64xbf16>, vector<64x48xbf16>, vector<16x48xf32> -> vector<16x48xf32>
    %c0_9 = arith.constant 0 : index
    %c0_10 = arith.constant 0 : index
    %12 = vector.load %arg5[%c0_9, %c0_10] : memref<1x48xf32, #tpu.memory_space<vmem>>, vector<1x48xf32>
    %13 = vector.broadcast %12 : vector<1x48xf32> to vector<16x48xf32>
    %14 = arith.addf %11, %13 : vector<16x48xf32>
    %cst_11 = arith.constant 0.000000e+00 : f32
    %15 = vector.broadcast %cst_11 : f32 to vector<16x48xf32>
    %16 = arith.maximumf %14, %15 : vector<16x48xf32>
    %17 = arith.truncf %16 : vector<16x48xf32> to vector<16x48xbf16>
    %c0_12 = arith.constant 0 : index
    %c0_13 = arith.constant 0 : index
    %18 = vector.load %arg6[%c0_12, %c0_13] : memref<48x16xbf16, #tpu.memory_space<vmem>>, vector<48x16xbf16>
    %cst_14 = arith.constant dense<0.000000e+00> : vector<16x16xf32>
    %19 = tpu.matmul %17, %18, %cst_14 {dimension_numbers = #tpu.dot_dimension_numbers<[1], [0], [0], [1], [0, 0, 1, 1], [], []>} : vector<16x48xbf16>, vector<48x16xbf16>, vector<16x16xf32> -> vector<16x16xf32>
    %c0_15 = arith.constant 0 : index
    %c0_16 = arith.constant 0 : index
    %20 = vector.load %arg7[%c0_15, %c0_16] : memref<1x16xf32, #tpu.memory_space<vmem>>, vector<1x16xf32>
    %21 = vector.broadcast %20 : vector<1x16xf32> to vector<16x16xf32>
    %22 = arith.addf %19, %21 : vector<16x16xf32>
    %c0_17 = arith.constant 0 : index
    %c0_18 = arith.constant 0 : index
    %23 = vector.load %arg8[%c0_17, %c0_18] : memref<16x16xf32, #tpu.memory_space<vmem>>, vector<16x16xf32>
    tpu.vector_store %arg8[%c0_17, %c0_18], %22 {strides = array<i32>} : memref<16x16xf32, #tpu.memory_space<vmem>>, vector<16x16xf32>,
    return
  }
  func.func @transform_0(%arg0: i32) -> (i32, i32) {
    %c0_i32 = arith.constant 0 : i32
    %c0_i32_0 = arith.constant 0 : i32
    return %arg0, %c0_i32 : i32, i32
  }
  func.func @transform_1(%arg0: i32) -> (i32, i32) {
    %c0_i32 = arith.constant 0 : i32
    %c0_i32_0 = arith.constant 0 : i32
    %c0_i32_1 = arith.constant 0 : i32
    return %c0_i32, %c0_i32_0 : i32, i32
  }
  func.func @transform_2(%arg0: i32) -> (i32, i32) {
    %c0_i32 = arith.constant 0 : i32
    %c0_i32_0 = arith.constant 0 : i32
    %c0_i32_1 = arith.constant 0 : i32
    return %c0_i32, %c0_i32_0 : i32, i32
  }
  func.func @transform_3(%arg0: i32) -> (i32, i32) {
    %c0_i32 = arith.constant 0 : i32
    %c0_i32_0 = arith.constant 0 : i32
    %c0_i32_1 = arith.constant 0 : i32
    return %c0_i32, %c0_i32_0 : i32, i32
  }
  func.func @transform_4(%arg0: i32) -> (i32, i32) {
    %c0_i32 = arith.constant 0 : i32
    %c0_i32_0 = arith.constant 0 : i32
    %c0_i32_1 = arith.constant 0 : i32
    return %c0_i32, %c0_i32_0 : i32, i32
  }
  func.func @transform_5(%arg0: i32) -> (i32, i32) {
    %c0_i32 = arith.constant 0 : i32
    %c0_i32_0 = arith.constant 0 : i32
    %c0_i32_1 = arith.constant 0 : i32
    return %c0_i32, %c0_i32_0 : i32, i32
  }
  func.func @transform_6(%arg0: i32) -> (i32, i32) {
    %c0_i32 = arith.constant 0 : i32
    %c0_i32_0 = arith.constant 0 : i32
    %c0_i32_1 = arith.constant 0 : i32
    return %c0_i32, %c0_i32_0 : i32, i32
  }
  func.func @transform_7(%arg0: i32) -> (i32, i32) {
    %c0_i32 = arith.constant 0 : i32
    %c0_i32_0 = arith.constant 0 : i32
    return %arg0, %c0_i32 : i32, i32
  }
}

</mosaic_0001>

<bundles_post_ra>
// kernel: simple_nn_forward.1
= control target key start
LH: loop header
LB: loop body
LE: loop exit
PB: predicated region body
PF: predicated region fallthrough
CT: control target
= control target key end

     0   :  { %s607_s24 = smov 0   ;;  %s667_s0 = inlined_call_operand.vmem [shape: f32[32,32], index: 0, kind: input, shape index: {}]   ;;  %s668_s1 = inlined_call_operand.vmem [shape: bf16[32,64], index: 1, kind: input, shape index: {}]   ;;  %s669_s2 = inlined_call_operand.vmem [shape: f32[1,64], index: 2, kind: input, shape index: {}]   ;;  %s670_s3 = inlined_call_operand.vmem [shape: bf16[64,48], index: 3, kind: input, shape index: {}]   ;;  %s671_s4 = inlined_call_operand.vmem [shape: f32[1,48], index: 4, kind: input, shape index: {}]   ;;  %s672_s5 = inlined_call_operand.vmem [shape: bf16[48,16], index: 5, kind: input, shape index: {}]   ;;  %s673_s6 = inlined_call_operand.vmem [shape: f32[1,16], index: 6, kind: input, shape index: {}]   ;;  %s674_s7 = inlined_call_operand.vmem [shape: f32[32,16], index: 7, kind: output, shape index: {}]  }
   0x1 LB: > { %s489_s25 = sadd.s32 4294967295, %s565_s24   ;;  %p493_p0 = scmp.ge.s32.totalorder %s565_s24, 1  ;;  %s565_s24 = sphi %s607_s24, %s17_s24  }
   0x2   : > { %p238_p1 = scmp.lt.s32.totalorder %s565_s24, 3 }
   0x4   : > { %p239_p2 = pnand %p493_p0, %p238_p1 }
   0x5   : > { %s494_s28 = sshll.u32 (!%p239_p2), %s489_s25, 1 }
   0x6   : > { %242 = sbr.rel (%p239_p2) target bundleno = 442 (0x1ba), region = 48  ;;  %p271_p3 = scmp.lt.s32.totalorder (!%p239_p2), %s494_s28, 3 }
   0xb   : > { %v540_v0 = vld [vmem:[%s668_s1 + $0x8] sm:$0xff]  ;;  %v539_v1 = vld [vmem:[%s668_s1] sm:$0xff]  ;;  %s676_s28 = smov (!%p271_p3, %s494_s28), 3  ;;  %vm306_vm0 = vcmask 261120   ;;  %v544_v5 = vld [vmem:[%s670_s3 + $0x18] sm:$0xff]  ;;  %vm363_vm1 = vcmask 523264  }
   0xc   : > { %316 = vmatpush.bf16.msra.mxu0 %v540_v0  ;;  %s495_s8 = sshll.u32 %s676_s28, 3  ;;  %371 = vmatpush.bf16.msra.mxu1 %v544_v5  ;;  %v543_v6 = vld [vmem:[%s670_s3 + $0x10] sm:$0xff]  ;;  %v542_v7 = vld [vmem:[%s670_s3 + $0x8] sm:$0xff]  ;;  %v541_v8 = vld [vmem:[%s670_s3] sm:$0xff]  ;;  %vm412_vm2 = vcmask 392192   ;;  %vm430_vm3 = vcmask 130048  }
   0xd   : > { %s274_s11 = scalar_lea.vmem %s667_s0, %s495_s8  ;;  %v556_v10 = vld [vmem:[%s669_s2] ss:$0 sm:$0xff]  ;;  %v547_v17 = vld [vmem:[%s672_s5 + $0x10] sm:$0xff]  ;;  %v546_v18 = vld [vmem:[%s672_s5 + $0x8] sm:$0xff]  ;;  %s280_s14 = scalar_lea.vmem %s674_s7, %s495_s8 }
   0xe   : > { %v283_v2 = vld [vmem:[%s274_s11] sm:$0xff]  ;;  %v284_v3 = vld [vmem:[%s274_s11 + $0x8] sm:$0xff]  ;;  %421 = vmatpush.bf16.msra.mxu2 %v547_v17 }
   0xf   : > { %v285_v4 = vpack.c.bf16 %v284_v3, %v283_v2  ;;  %v545_v19 = vld [vmem:[%s672_s5] sm:$0xff] }
  0x10   : > { %317 = vmatpush.bf16.msra.mxu0 %v539_v1  ;;  %372 = vmatpush.bf16.msra.mxu1 %v543_v6  ;;  %v557_v21 = vld [vmem:[%s671_s4] ss:$0 sm:$0xff] }
  0x11   : > { %v558_v28 = vld [vmem:[%s673_s6] ss:$0 sm:$0xff] }
  0x12   : > { %422 = vmatpush.bf16.msra.mxu2 %v546_v18 }
  0x13   : > { %506 = vmatmul.msk.bf16.vlgmr.msra.gmra.mxu0 %vm306_vm0, %v285_v4 }
  0x14   : > { %373 = vmatpush.bf16.msra.mxu1 %v542_v7 }
  0x16   : > { %423 = vmatpush.bf16.msra.mxu2 %v545_v19 }
  0x18   : > { %374 = vmatpush.bf16.msra.mxu1 %v541_v8 }
  0x90   : > { %v319_v9 = vpop.f32.mrf.mxu0 }
  0x91   : > { %v320_v11 = vadd.f32 %v556_v10, %v319_v9 }
  0x93   : > { %v324_v14 = vmax.f32 %v320_v11, 0.0 }
  0x98   : > { %v321_v12 = vpop.f32.mrf.mxu0 }
  0x99   : > { %v322_v13 = vadd.f32 %v556_v10, %v321_v12 }
  0x9b   : > { %v325_v15 = vmax.f32 %v322_v13, 0.0 }
  0x9d   : > { %v326_v16 = vpack.c.bf16 %v325_v15, %v324_v14 }
  0x9f   : > { %523 = vmatmul.msk.bf16.vlgmr.msra.gmra.mxu1 %vm363_vm1, %v326_v16 }
 0x11c   : > { %v376_v20 = vpop.f32.mrf.mxu1 }
 0x11d   : > { %v377_v22 = vadd.f32 %v557_v21, %v376_v20 }
 0x11f   : > { %v381_v25 = vmax.f32 %v377_v22, 0.0 }
 0x124   : > { %v378_v23 = vpop.f32.mrf.mxu1 }
 0x125   : > { %v379_v24 = vadd.f32 %v557_v21, %v378_v23 }
 0x127   : > { %v382_v26 = vmax.f32 %v379_v24, 0.0 }
 0x129   : > { %v383_v27 = vpack.c.bf16 %v382_v26, %v381_v25 }
 0x12b   : > { %536 = vmatmul.msk.bf16.vlgmr.msra.gmra.mxu2 %vm412_vm2, %v383_v27 }
 0x1ae   : > { %v425_v29 = vpop.f32.mrf.mxu2 }
 0x1af   : > { %v426_v30 = vadd.f32 %v558_v28, %v425_v29 }
 0x1b1   : > { %431 = vst.msk [vmem:[%s280_s14] sm:$0xff] %vm430_vm3, %v426_v30 }
 0x1b6   : > { %v427_v31 = vpop.f32.mrf.mxu2 }
 0x1b7   : > { %v428_v32 = vadd.f32 %v558_v28, %v427_v31 }
 0x1b9   : > { %432 = vst.msk [vmem:[%s280_s14 + $0x8] sm:$0xff] %vm430_vm3, %v428_v32 }
 0x1ba PF: > { %s17_s24 = sadd.s32 1, %s565_s24  }
 0x1bb   : > { %p14_p4 = scmp.ge.s32.totalorder %s17_s24, 4  }
 0x1bd   :  { %16 = sbr.rel (!%p14_p4) target bundleno = 1 (0x1), region = 78 }

</bundles_post_ra>
